<compile_context>
chip_gen: v7x
topology: tpu7x:2x2x1
jax: 0.10.0
libtpu: 0.0.40
codegen_flags: <defaults>
</compile_context>

<pallas_src>
import functools

import jax
import jax.numpy as jnp
from jax import lax
from jax.experimental import pallas as pl
from jax.experimental.pallas import tpu as pltpu


_CLAMP_MIN = 1e-8
_LANE = 128
_CHUNK = 512  # lanes kept live inside the extraction loop (bounds vreg pressure)


def _vmem_budget():
    """Per-input-buffer DMA budget (bytes) and explicit scoped-VMEM limit, generation aware."""
    try:
        vmem_phys = int(pltpu.get_tpu_info().vmem_capacity_bytes)
    except Exception:
        vmem_phys = 64 << 20  # most conservative generation (v7x per-TC physical)
    per_buf = min(16 << 20, vmem_phys // 8)           # 16 MiB on v5e/v6e, 8 MiB on v7x
    limit = min(per_buf * 2 + (8 << 20), vmem_phys // 2)
    return per_buf, limit


def _choose_tiling(B, N, per_buf_bytes):
    """Pick (tile_n, padded_n): tile as big as the VMEM budget allows, <=12.5% lane padding."""
    per_buf_elems = per_buf_bytes // 4
    cap = max(_LANE, (per_buf_elems // max(B, 1)) // _LANE * _LANE)
    n128 = -(-N // _LANE) * _LANE
    for tn in (65536, 32768, 16384, 8192, 4096, 2048, 1024, 512, 256, 128):
        if tn > cap or tn > n128:
            continue
        n_pad = -(-n128 // tn) * tn
        if n_pad - n128 <= n128 // 8:
            return tn, n_pad
    return _LANE, n128


def _shapelets_loss_kernel(x_ref, out_ref, *, k, dist_measure):
    # x_ref: (B, TN) VMEM tile.  out_ref: (1, 1, 1) f32 per-tile partial sum.
    B, TN = x_ref.shape
    largest = dist_measure == "cosine"
    iters = min(k, B - k)                 # complement trick: loop min(k, B-k) times
    use_complement = iters < k            # i.e. B - k < k
    extract_largest = largest != use_complement
    sentinel = jnp.float32(-jnp.inf) if extract_largest else jnp.float32(jnp.inf)
    unroll = iters if 0 < iters <= 8 else 8

    # Lower-triangular ones: MXU inclusive prefix-count along sublanes, used to mask
    # exactly the FIRST tied occurrence.  bf16 inputs -> single-pass MXU; values are
    # exact 0/1 and accumulation is f32, so `cnt == 1.0` stays exact.
    ri = lax.broadcasted_iota(jnp.int32, (B, B), 0)
    ci = lax.broadcasted_iota(jnp.int32, (B, B), 1)
    tri = (ci <= ri).astype(jnp.bfloat16)

    chunk = min(TN, _CHUNK)
    n_chunks = TN // chunk

    def chunk_contrib(xc):
        # xc: (B, chunk) f32, clamped, UN-masked (the complement path needs the raw totals).
        def body(_, carry):
            xm, acc = carry
            if extract_largest:
                m = jnp.max(xm, axis=0, keepdims=True)       # (1, chunk), one XLU reduce
            else:
                m = jnp.min(xm, axis=0, keepdims=True)
            is_ext = xm == m                                  # (B, chunk)
            cnt = jnp.dot(tri, is_ext.astype(jnp.bfloat16),   # prefix count of ties
                          preferred_element_type=jnp.float32)
            first = jnp.logical_and(is_ext, cnt == 1.0)       # exactly one per column
            xm = jnp.where(first, sentinel, xm)
            return xm, acc + m

        acc = jnp.zeros((1, chunk), jnp.float32)
        if iters > 0:
            _, acc = lax.fori_loop(0, iters, body, (xc, acc), unroll=unroll)
        if use_complement:
            # sum of desired top-k = per-column total - sum of (B-k) opposite extremes
            col_tot = jnp.sum(xc, axis=0, keepdims=True)
            acc = col_tot - acc
        return jnp.sum(acc, axis=1, keepdims=True)            # (1, 1)

    def load_chunk(start):
        return jnp.maximum(x_ref[:, pl.ds(start, chunk)].astype(jnp.float32),
                           jnp.float32(_CLAMP_MIN))           # torch.clamp(min=1e-08)

    if n_chunks == 1:
        total = chunk_contrib(jnp.maximum(x_ref[...].astype(jnp.float32),
                                          jnp.float32(_CLAMP_MIN)))
    else:
        def chunk_body(c, tot):
            start = pl.multiple_of(c * chunk, chunk)
            return tot + chunk_contrib(load_chunk(start))
        total = lax.fori_loop(0, n_chunks, chunk_body,
                              jnp.zeros((1, 1), jnp.float32), unroll=False)

    out_ref[...] = total.reshape(1, 1, 1)


def shapelets_distance_loss(x, *, dist_measure="euclidean", k=6, tile_n=None):
    """x: (batch_size, n_shapelets). Returns scalar float32 loss (= ShapeletsDistanceLoss.forward)."""
    if dist_measure not in ("euclidean", "cosine"):
        raise ValueError("Parameter 'dist_measure' must be either of 'euclidean' or 'cosine'.")
    if not isinstance(k, int):
        raise ValueError("Parameter 'k' must be an integer.")
    if x.ndim != 2:
        raise ValueError("Input must have shape (batch_size, n_shapelets).")
    B, N = x.shape
    if not 1 <= k <= B:
        raise ValueError(f"Parameter 'k' must satisfy 1 <= k <= batch_size ({B}), got {k}.")

    per_buf_bytes, vmem_limit = _vmem_budget()
    if tile_n is not None:
        if tile_n % _LANE != 0:
            raise ValueError("tile_n must be a multiple of 128.")
        tn = tile_n
        n_pad = -(-N // tn) * tn
    else:
        tn, n_pad = _choose_tiling(B, N, per_buf_bytes)

    n_extra = n_pad - N
    if n_extra:
        pad = jnp.full((B, n_extra), _CLAMP_MIN, dtype=x.dtype)
        xp = jnp.concatenate([x, pad], axis=1)
    else:
        xp = x
    num_tiles = n_pad // tn

    iters = max(min(k, B - k), 1)
    itemsize = jnp.dtype(x.dtype).itemsize
    cost = pl.CostEstimate(
        flops=int(B * n_pad * (6 * iters + 2)),
        transcendentals=0,
        bytes_accessed=int(B * n_pad * itemsize + 4 * num_tiles),
    )

    kernel = functools.partial(_shapelets_loss_kernel, k=k, dist_measure=dist_measure)
    partials = pl.pallas_call(
        kernel,
        out_shape=jax.ShapeDtypeStruct((num_tiles, 1, 1), jnp.float32),
        grid=(num_tiles,),
        in_specs=[pl.BlockSpec((B, tn), lambda i: (0, i))],
        out_specs=pl.BlockSpec((1, 1, 1), lambda i: (i, 0, 0)),
        compiler_params=pltpu.CompilerParams(
            dimension_semantics=("parallel",),
            vmem_limit_bytes=int(vmem_limit)),
        cost_estimate=cost,
    )(xp)

    total = jnp.sum(partials)
    if n_extra:
        # Each padded column (all values = 1e-8) contributes exactly k * 1e-8 to the sum.
        total = total - jnp.float32(n_extra) * jnp.float32(k) * jnp.float32(_CLAMP_MIN)
    mean_top = total / jnp.float32(k * N)
    if dist_measure == "cosine":
        return jnp.float32(1.0) - mean_top
    return mean_top


def _reference_loss(x, *, dist_measure="euclidean", k=6):
    xc = jnp.maximum(x.astype(jnp.float32), 1e-8)
    s = jnp.sort(xc, axis=0)
    if dist_measure == "euclidean":
        return jnp.mean(s[:k])
    return jnp.mean(1.0 - s[-k:])


if __name__ == "__main__":
    key = jax.random.PRNGKey(0)
    k1, k2, k3 = jax.random.split(key, 3)

    # Shapelet transform output: (batch_size, n_shapelets).
    x_small = jax.random.uniform(k1, (8, 16), jnp.float32, minval=-0.5, maxval=2.0)
    x_ties = jnp.round(x_small * 4.0) / 4.0     # duplicates along batch (tie-break path)
    x_big = jax.random.uniform(k2, (8, 2048), jnp.float32, minval=-0.5, maxval=2.0)
    x_ragged = jax.random.uniform(k3, (8, 600), jnp.float32, minval=-0.5, maxval=2.0)

    checks = [
        (x_small, "euclidean", 6, None),   # complement path (B-k=2 < k), lane pad 16 -> 128
        (x_small, "cosine", 6, None),
        (x_ties, "euclidean", 6, None),    # ties (incl. clamped duplicates at 1e-8)
        (x_ties, "cosine", 6, None),
        (x_big, "euclidean", 6, 1024),     # 2 lane tiles x 2 chunks, parallel grid axis
        (x_big, "cosine", 2, 1024),        # direct path (k <= B-k)
        (x_ragged, "euclidean", 3, None),  # N % 128 != 0 -> pad-and-correct
        (x_ragged, "cosine", 8, None),     # k == B edge case (top-k = everything)
    ]
    for xv, dm, kk, tnn in checks:
        got = shapelets_distance_loss(xv, dist_measure=dm, k=kk, tile_n=tnn)
        jax.block_until_ready(got)
        ref = _reference_loss(xv, dist_measure=dm, k=kk)
        assert jnp.allclose(got, ref, rtol=1e-5, atol=1e-6), (dm, kk, float(got), float(ref))

    print("KERNEL_OK")
</pallas_src>

<mosaic_0001>
module attributes {stable_mosaic.version = 11 : i64} {
  func.func @_shapelets_loss_kernel(%arg0: i32, %arg1: memref<8x128xf32, #tpu.memory_space<vmem>>, %arg2: memref<1x1x1xf32, #tpu.memory_space<vmem>>) attributes {dimension_semantics = [#tpu.dimension_semantics<parallel>], iteration_bounds = array<i64: 1>, scalar_prefetch = 0 : i64, scratch_operands = 0 : i64, tpu.core_type = #tpu.core_type<tc>, window_params = [{transform_indices = @transform_0, window_bounds = array<i64: 8, 128>}, {transform_indices = @transform_1, window_bounds = array<i64: 1, 1, 1>}]} {
    %0 = tpu.iota {dimensions = array<i32: 0>} : vector<8x8xi32>
    %1 = tpu.iota {dimensions = array<i32: 1>} : vector<8x8xi32>
    %2 = arith.cmpi sle, %1, %0 : vector<8x8xi32>
    %3 = arith.extui %2 : vector<8x8xi1> to vector<8x8xi32>
    %4 = arith.sitofp %3 : vector<8x8xi32> to vector<8x8xf32>
    %5 = arith.truncf %4 : vector<8x8xf32> to vector<8x8xbf16>
    %c0 = arith.constant 0 : index
    %c0_0 = arith.constant 0 : index
    %6 = vector.load %arg1[%c0, %c0_0] : memref<8x128xf32, #tpu.memory_space<vmem>>, vector<8x128xf32>
    %cst = arith.constant 9.99999993E-9 : f32
    %7 = vector.broadcast %cst : f32 to vector<8x128xf32>
    %8 = arith.maximumf %6, %7 : vector<8x128xf32>
    %cst_1 = arith.constant 0.000000e+00 : f32
    %9 = vector.broadcast %cst_1 : f32 to vector<1x128xf32>
    %cst_2 = arith.constant 0xFF800000 : f32
    %c0_i32 = arith.constant 0 : i32
    %cst_3 = arith.constant dense<0xFF800000> : vector<128xf32>
    %10 = vector.multi_reduction <maximumf>, %8, %cst_3 [0] : vector<8x128xf32> to vector<128xf32>
    %11 = vector.shape_cast %10 : vector<128xf32> to vector<1x128xf32>
    %12 = vector.broadcast %11 : vector<1x128xf32> to vector<8x128xf32>
    %13 = arith.cmpf oeq, %8, %12 : vector<8x128xf32>
    %14 = arith.extui %13 : vector<8x128xi1> to vector<8x128xi32>
    %15 = arith.sitofp %14 : vector<8x128xi32> to vector<8x128xf32>
    %16 = arith.truncf %15 : vector<8x128xf32> to vector<8x128xbf16>
    %cst_4 = arith.constant dense<0.000000e+00> : vector<8x128xf32>
    %17 = tpu.matmul %5, %16, %cst_4 {dimension_numbers = #tpu.dot_dimension_numbers<[1], [0], [0], [1], [0, 0, 1, 1], [], []>} : vector<8x8xbf16>, vector<8x128xbf16>, vector<8x128xf32> -> vector<8x128xf32>
    %cst_5 = arith.constant 1.000000e+00 : f32
    %18 = vector.broadcast %cst_5 : f32 to vector<8x128xf32>
    %19 = arith.cmpf oeq, %17, %18 : vector<8x128xf32>
    %20 = arith.andi %13, %19 : vector<8x128xi1>
    %21 = vector.broadcast %cst_2 : f32 to vector<8x128xf32>
    %22 = arith.select %20, %21, %8 : vector<8x128xi1>, vector<8x128xf32>
    %23 = arith.addf %9, %11 : vector<1x128xf32>
    %c1_i32 = arith.constant 1 : i32
    %cst_6 = arith.constant dense<0xFF800000> : vector<128xf32>
    %24 = vector.multi_reduction <maximumf>, %22, %cst_6 [0] : vector<8x128xf32> to vector<128xf32>
    %25 = vector.shape_cast %24 : vector<128xf32> to vector<1x128xf32>
    %26 = vector.broadcast %25 : vector<1x128xf32> to vector<8x128xf32>
    %27 = arith.cmpf oeq, %22, %26 : vector<8x128xf32>
    %28 = arith.extui %27 : vector<8x128xi1> to vector<8x128xi32>
    %29 = arith.sitofp %28 : vector<8x128xi32> to vector<8x128xf32>
    %30 = arith.truncf %29 : vector<8x128xf32> to vector<8x128xbf16>
    %cst_7 = arith.constant dense<0.000000e+00> : vector<8x128xf32>
    %31 = tpu.matmul %5, %30, %cst_7 {dimension_numbers = #tpu.dot_dimension_numbers<[1], [0], [0], [1], [0, 0, 1, 1], [], []>} : vector<8x8xbf16>, vector<8x128xbf16>, vector<8x128xf32> -> vector<8x128xf32>
    %cst_8 = arith.constant 1.000000e+00 : f32
    %32 = vector.broadcast %cst_8 : f32 to vector<8x128xf32>
    %33 = arith.cmpf oeq, %31, %32 : vector<8x128xf32>
    %34 = arith.andi %27, %33 : vector<8x128xi1>
    %35 = vector.broadcast %cst_2 : f32 to vector<8x128xf32>
    %36 = arith.select %34, %35, %22 : vector<8x128xi1>, vector<8x128xf32>
    %37 = arith.addf %23, %25 : vector<1x128xf32>
    %cst_9 = arith.constant dense<0.000000e+00> : vector<128xf32>
    %38 = vector.multi_reduction <add>, %8, %cst_9 [0] : vector<8x128xf32> to vector<128xf32>
    %39 = vector.shape_cast %38 : vector<128xf32> to vector<1x128xf32>
    %40 = arith.subf %39, %37 : vector<1x128xf32>
    %cst_10 = arith.constant dense<0.000000e+00> : vector<1xf32>
    %41 = vector.multi_reduction <add>, %40, %cst_10 [1] : vector<1x128xf32> to vector<1xf32>
    %42 = vector.shape_cast %41 : vector<1xf32> to vector<1x1xf32>
    %43 = vector.shape_cast %42 : vector<1x1xf32> to vector<1x1x1xf32>
    %c0_11 = arith.constant 0 : index
    %c0_12 = arith.constant 0 : index
    %c0_13 = arith.constant 0 : index
    %44 = vector.load %arg2[%c0_11, %c0_12, %c0_13] : memref<1x1x1xf32, #tpu.memory_space<vmem>>, vector<1x1x1xf32>
    tpu.vector_store %arg2[%c0_11, %c0_12, %c0_13], %43 {strides = array<i32>} : memref<1x1x1xf32, #tpu.memory_space<vmem>>, vector<1x1x1xf32>,
    return
  }
  func.func @transform_0(%arg0: i32) -> (i32, i32) {
    %c0_i32 = arith.constant 0 : i32
    %c0_i32_0 = arith.constant 0 : i32
    return %c0_i32, %arg0 : i32, i32
  }
  func.func @transform_1(%arg0: i32) -> (i32, i32, i32) {
    %c0_i32 = arith.constant 0 : i32
    %c0_i32_0 = arith.constant 0 : i32
    %c0_i32_1 = arith.constant 0 : i32
    return %arg0, %c0_i32, %c0_i32_0 : i32, i32, i32
  }
}

</mosaic_0001>

<bundles_post_ra>
// kernel: tpu_custom_call.1
= control target key start
LH: loop header
LB: loop body
LE: loop exit
PB: predicated region body
PF: predicated region fallthrough
CT: control target
= control target key end

     0   :  { %6 = vsyncpa [#allocation3], 0  ;;  %s228_s0 = inlined_call_operand.hbm [shape: f32[8,128], index: 0, kind: input, shape index: {}]   ;;  %s229_s1 = inlined_call_operand.hbm [shape: f32[1,1,1], index: 1, kind: output, shape index: {}]  }
   0x1   :  { %7 = vsyncpa [#allocation4], 0  ;;  %s190_s6 = smov [#allocation2]   ;;  %s142_s10 = scalar_lea.hbm %s228_s0, 128 }
   0x2   :  { %s14_s7 = sshll.u32 %s190_s6, 4  ;;  %p143_p0 = scmp.ne.s32.totalorder %s228_s0, %s142_s10  ;;  %s15_s7 = int_to_ptr.vmem [resolvable:$true] %s14_s7 }
   0x3   :  { %p146_p1 = scmp.lt.u32.totalorder %s142_s10, %s228_s0 }
   0x5   :  { %p148_p2 = pnand %p146_p1, %p143_p0 }
   0x7   :  { %151 = shalt.err (!%p148_p2)
}
   0x8   :  { %s152_s15 = scalar_lea.vmem %s15_s7, 128  ;;  %p157_p4 = scmp.lt.s32.totalorder %s15_s7, %s15_s7 }
   0x9   :  { %p153_p3 = scmp.ne.s32.totalorder %s15_s7, %s152_s15  ;;  %p158_p5 = scmp.lt.s32.totalorder %s152_s15, %s152_s15 }
   0xb   :  { %p159_p6 = por %p158_p5, %p157_p4 }
   0xd   :  { %p160_p7 = pnand %p159_p6, %p153_p3 }
   0xf   :  { %163 = shalt.err (!%p160_p7)
}
  0x10   :  { %17 = dma.hbm_to_vmem [thread:$0]  %s228_s0, 128, %s15_s7, [#allocation3]  }
  0x11   :  { %186 = dma.done.wait [#allocation3], 128  }
  0x12   :  { %187 = vsyncadd [#allocation3], 4294967168  ;;  %v191_v0 = vmov 0.0   ;;  %vm192_vm0 = vmmov 0   ;;  %v30_v1 = vld [vmem:[#allocation2] sm:$0xff]  ;;  %v22_v4 = vlaneseq  ;;  %vm46_vm3 = vcmask 1043456  }
  0x13   :  { %132 = vmatprep.subr.bf16.mxu0 %v191_v0  ;;  %134 = vmatprep.mubr.msk.bf16.mxu0 %vm192_vm0, %v191_v0  ;;  %v31_v2 = vmax.f32 %v30_v1, 1e-08  ;;  %vm42_vm4 = vcmask 64512   ;;  %s193_s0 = smov [#allocation5]   ;;  %vm110_vm7 = vcmask 0  }
  0x14   :  { %v23_v7 = vshrl.u32 %v22_v4, 7  ;;  %v25_v8 = vand.u32 127, %v22_v4  ;;  %s118_s18 = sshll.u32 %s193_s0, 4  ;;  %s119_s18 = int_to_ptr.vmem [resolvable:$true] %s118_s18 }
  0x15   :  { %v32_v3 = vrot.slane %v31_v2, 4  ;;  %s164_s19 = scalar_lea.vmem %s119_s18, 16  ;;  %s168_s20 = scalar_lea.vmem %s119_s18, 32 }
  0x16   :  { %vm26_vm1 = vcmp.le.s32.totalorder %v25_v8, %v23_v7  ;;  %p165_p8 = scmp.ne.s32.totalorder %s119_s18, %s164_s19  ;;  %p169_p9 = scmp.lt.s32.totalorder %s119_s18, %s119_s18 }
  0x17   :  { %v33_v5 = vmax.f32 %v31_v2, %v32_v3  ;;  %v127_v12 = vsel %vm26_vm1, 1.0, %v191_v0  ;;  %v102_v17 = vadd.f32 %v32_v3, %v31_v2  ;;  %p170_p10 = scmp.lt.s32.totalorder %s168_s20, %s164_s19 }
  0x18   :  { %v29_v16 = vpack.c.bf16 %v127_v12, %v127_v12 }
  0x19   :  { %v34_v6 = vrot.slane %v33_v5, 2  ;;  %v103_v21 = vrot.slane %v102_v17, 2  ;;  %p171_p11 = por %p170_p10, %p169_p9 }
  0x1b   :  { %v35_v9 = vmax.f32 %v33_v5, %v34_v6  ;;  %v104_v26 = vadd.f32 %v103_v21, %v102_v17  ;;  %p172_p12 = pnand %p171_p11, %p165_p8 }
  0x1d   :  { %v36_v10 = vrot.slane %v35_v9, 1  ;;  %v105_v29 = vrot.slane %v104_v26, 1 }
  0x1f   :  { %v37_v11 = vmax.f32 %v35_v9, %v36_v10  ;;  %v106_v32 = vadd.f32 %v105_v29, %v104_v26 }
  0x21   :  { %vm38_vm2 = vcmp.eq.f32.partialorder %v31_v2, %v37_v11 }
  0x22   :  { %v128_v13 = vsel %vm38_vm2, 1.0, %v191_v0 }
  0x23   :  { %v41_v14 = vpack.c.bf16 %v128_v13, %v128_v13 }
  0x25   :  { %v48_v15 = vsel %vm46_vm3, %v41_v14, 0 }
  0x26   :  { %133 = vmatpush3.bf16.msra.mxu0 %v48_v15 }
  0x29   :  { %135 = vmatmul.mubr.msk.bf16.vlgmr.msra.gmra.mrb[0].mxu0 %vm42_vm4, %v29_v16 }
  0xfc   :  { %v84_v18 = vpop.f32.mrb[0].mxu0 }
  0xfd   :  { %vm90_vm5 = vcmp.eq.f32.partialorder %v84_v18, 1.0  ;;  %v136_v19 = vpop.f32.mrb[1].mxu0 }
  0xfe   :  { %vm91_vm6 = vmand %vm38_vm2, %vm90_vm5  ;;  %v87_v20 = vpop.f32.mrb[2].mxu0 }
  0xff   :  { %v92_v22 = vsel %vm91_vm6, -inf, %v31_v2  ;;  %v137_v23 = vpop.f32.mrb[3].mxu0 }
 0x100   :  { %v94_v24 = vrot.slane %v92_v22, 4 }
 0x102   :  { %v95_v25 = vmax.f32 %v92_v22, %v94_v24 }
 0x104   :  { %v96_v27 = vrot.slane %v95_v25, 2 }
 0x106   :  { %v97_v28 = vmax.f32 %v95_v25, %v96_v27 }
 0x108   :  { %v98_v30 = vrot.slane %v97_v28, 1 }
 0x10a   :  { %v99_v31 = vmax.f32 %v97_v28, %v98_v30 }
 0x10c   :  { %v100_v33 = vadd.f32 %v99_v31, %v37_v11 }
 0x10e   :  { %v107_v34 = vsub.f32 %v106_v32, %v100_v33 }
 0x110   :  { %108 = vadd.xlane.f32.xlu0 %v107_v34 }
 0x19d   :  { %v109_v35 = vpop.xlane.xlu0 %108 }
 0x19e   :  { %111 = vst.msk [vmem:[#allocation5] sm:$0x1] %vm110_vm7, %v109_v35 }
 0x19f   :  { %175 = shalt.err (!%p172_p12)
}
 0x1a0   :  { %s176_s23 = scalar_lea.hbm %s229_s1, 16 }
 0x1a1   :  { %p177_p13 = scmp.ne.s32.totalorder %s229_s1, %s176_s23  ;;  %p180_p0 = scmp.lt.u32.totalorder %s176_s23, %s229_s1 }
 0x1a3   :  { %p182_p1 = pnand %p180_p0, %p177_p13 }
 0x1a5   :  { %185 = shalt.err (!%p182_p1)
}
 0x1a6   :  { %121 = dma.vmem_to_hbm [thread:$0]  %s119_s18, 16, %s229_s1, [#allocation4]  }
 0x1a7   :  { %188 = dma.done.wait [#allocation4], 16  }
 0x1a8   :  { %189 = vsyncadd [#allocation4], 4294967280 }
 0x1a9   :  { %125 = vsyncpa [#allocation3], 1 }
 0x1aa   :  { %126 = vsyncpa [#allocation4], 1 }

</bundles_post_ra>
